<compile_context>
chip_gen: v7x
topology: tpu7x:2x2x1
jax: 0.10.0
libtpu: 0.0.40
codegen_flags: <defaults>
</compile_context>

<pallas_src>
import jax
import jax.numpy as jnp
from jax import lax
from jax.experimental import pallas as pl
from jax.experimental.pallas import tpu as pltpu


def _linear_kernel(x_ref, w_ref, b_ref, o_ref, acc_ref):
    # x_ref : [TB, TK]   (input dtype)
    # w_ref : [L,  TK]   (input dtype, PyTorch layout — contract on TK)
    # b_ref : [1,  L ]   f32
    # o_ref : [TB, L ]   (output dtype)
    # acc_ref: [TB, L]   f32 VMEM accumulator (persists across the K axis)
    k = pl.program_id(1)

    @pl.when(k == 0)
    def _init():
        acc_ref[...] = jnp.zeros_like(acc_ref)

    # x[TB, TK] · w[L, TK]^T  ->  [TB, L]   (f32 accumulation on the MXU)
    acc_ref[...] += lax.dot_general(
        x_ref[...],
        w_ref[...],
        dimension_numbers=(((1,), (1,)), ((), ())),
        preferred_element_type=jnp.float32,
    )

    @pl.when(k == pl.num_programs(1) - 1)
    def _finalize():
        o_ref[...] = (acc_ref[...] + b_ref[...]).astype(o_ref.dtype)


def _pick_tk(D, max_tk=1024):
    """Largest K-tile <= max_tk that is a multiple of 128 and divides D
    (falls back to the full D when no such tile exists or D is small)."""
    if D <= max_tk:
        return D
    for tk in range(max_tk, 127, -128):
        if D % tk == 0:
            return tk
    return D


def linear_classifier_forward(x, weight, bias, *, max_tb=512, max_tk=1024):
    """Forward pass of LinearClassifier.

    x      : [B, ...]            (trailing dims flattened, like x.view(B, -1))
    weight : [num_labels, dim]   (PyTorch nn.Linear convention, NOT transposed)
    bias   : [num_labels]
    returns: [B, num_labels]     (same dtype as x)
    """
    B = x.shape[0]
    x_flat = x.reshape(B, -1)
    D = x_flat.shape[1]
    L = weight.shape[0]
    assert weight.shape == (L, D), (weight.shape, (L, D))

    # Keep the (potentially bf16) input dtype for the big operands; f32 bias.
    if weight.dtype != x_flat.dtype:
        weight = weight.astype(x_flat.dtype)
    bias2 = bias.reshape(1, L).astype(jnp.float32)

    # Batch tiling (pad B up to a multiple of the tile when B > max_tb).
    TB = B if B <= max_tb else max_tb
    nb = pl.cdiv(B, TB)
    Bp = nb * TB
    if Bp != B:
        x_flat = jnp.pad(x_flat, ((0, Bp - B), (0, 0)))

    # Contraction-dim tiling (bounds per-step VMEM for large flattened D).
    TK = _pick_tk(D, max_tk)
    nk = D // TK

    out = pl.pallas_call(
        _linear_kernel,
        out_shape=jax.ShapeDtypeStruct((Bp, L), x_flat.dtype),
        grid_spec=pltpu.PrefetchScalarGridSpec(
            num_scalar_prefetch=0,
            grid=(nb, nk),  # reduction axis (K) last
            in_specs=[
                pl.BlockSpec((TB, TK), lambda i, k: (i, k)),   # x tiles stream
                pl.BlockSpec((L, TK), lambda i, k: (0, k)),    # weight (no transpose)
                pl.BlockSpec((1, L), lambda i, k: (0, 0)),     # bias resident
            ],
            out_specs=pl.BlockSpec((TB, L), lambda i, k: (i, 0)),
            scratch_shapes=[pltpu.VMEM((TB, L), jnp.float32)],
        ),
        compiler_params=pltpu.CompilerParams(
            dimension_semantics=("parallel", "arbitrary"),
        ),
    )(x_flat, weight, bias2)

    return out[:B] if Bp != B else out


if __name__ == "__main__":
    key = jax.random.PRNGKey(0)
    k_x, k_w = jax.random.split(key)

    # Small shapes: x = [2, 4, 16, 16]  ->  dim = 4*16*16 = 1024, num_labels = 1
    B, C, H, W = 2, 4, 16, 16
    dim = C * H * W
    num_labels = 1

    x = jax.random.normal(k_x, (B, C, H, W), dtype=jnp.float32)

    # Deterministic parameter init mirroring the module's __init__:
    #   weight ~ Normal(0, 0.01), bias = 0
    weight = 0.01 * jax.random.normal(k_w, (num_labels, dim), dtype=jnp.float32)
    bias = jnp.zeros((num_labels,), dtype=jnp.float32)

    out = linear_classifier_forward(x, weight, bias)
    out = jax.block_until_ready(out)

    # Pure-JAX reference (flatten + affine), same semantics as the PyTorch module.
    ref = x.reshape(B, -1) @ weight.T + bias
    assert out.shape == (B, num_labels), out.shape
    assert jnp.allclose(out, ref, atol=1e-5, rtol=1e-5)

    print("KERNEL_OK")
</pallas_src>

<mosaic_0001>
module attributes {stable_mosaic.version = 11 : i64} {
  func.func @_linear_kernel(%arg0: i32, %arg1: i32, %arg2: memref<2x1024xf32, #tpu.memory_space<vmem>>, %arg3: memref<1x1024xf32, #tpu.memory_space<vmem>>, %arg4: memref<1x1xf32, #tpu.memory_space<vmem>>, %arg5: memref<2x1xf32, #tpu.memory_space<vmem>>, %arg6: memref<2x1xf32, #tpu.memory_space<vmem>>) attributes {dimension_semantics = [#tpu.dimension_semantics<parallel>, #tpu.dimension_semantics<arbitrary>], iteration_bounds = array<i64: 1, 1>, scalar_prefetch = 0 : i64, scratch_operands = 1 : i64, tpu.core_type = #tpu.core_type<tc>, window_params = [{transform_indices = @transform_0, window_bounds = array<i64: 2, 1024>}, {transform_indices = @transform_1, window_bounds = array<i64: 1, 1024>}, {pipeline_mode = #tpu.pipeline_mode<synchronous>, transform_indices = @transform_2, window_bounds = array<i64: 1, 1>}, {transform_indices = @transform_3, window_bounds = array<i64: 2, 1>}]} {
    %c0_i32 = arith.constant 0 : i32
    %0 = arith.cmpi eq, %arg1, %c0_i32 : i32
    %1 = arith.extui %0 : i1 to i32
    %c0_i32_0 = arith.constant 0 : i32
    %2 = arith.cmpi ne, %1, %c0_i32_0 : i32
    scf.if %2 {
      %cst_10 = arith.constant 0.000000e+00 : f32
      %12 = vector.broadcast %cst_10 : f32 to vector<2x1xf32>
      %c0_11 = arith.constant 0 : index
      %c0_12 = arith.constant 0 : index
      %13 = vector.load %arg6[%c0_11, %c0_12] : memref<2x1xf32, #tpu.memory_space<vmem>>, vector<2x1xf32>
      tpu.vector_store %arg6[%c0_11, %c0_12], %12 {strides = array<i32>} : memref<2x1xf32, #tpu.memory_space<vmem>>, vector<2x1xf32>,
    } else {
    }
    %c0 = arith.constant 0 : index
    %c0_1 = arith.constant 0 : index
    %3 = vector.load %arg6[%c0, %c0_1] : memref<2x1xf32, #tpu.memory_space<vmem>>, vector<2x1xf32>
    %c0_2 = arith.constant 0 : index
    %c0_3 = arith.constant 0 : index
    %4 = vector.load %arg2[%c0_2, %c0_3] : memref<2x1024xf32, #tpu.memory_space<vmem>>, vector<2x1024xf32>
    %c0_4 = arith.constant 0 : index
    %c0_5 = arith.constant 0 : index
    %5 = vector.load %arg3[%c0_4, %c0_5] : memref<1x1024xf32, #tpu.memory_space<vmem>>, vector<1x1024xf32>
    %cst = arith.constant dense<0.000000e+00> : vector<2x1xf32>
    %6 = tpu.matmul %4, %5, %cst {dimension_numbers = #tpu.dot_dimension_numbers<[1], [1], [0], [0], [0, 0, 1, 0], [], []>} : vector<2x1024xf32>, vector<1x1024xf32>, vector<2x1xf32> -> vector<2x1xf32>
    %7 = arith.addf %3, %6 : vector<2x1xf32>
    %c0_6 = arith.constant 0 : index
    %c0_7 = arith.constant 0 : index
    %8 = vector.load %arg6[%c0_6, %c0_7] : memref<2x1xf32, #tpu.memory_space<vmem>>, vector<2x1xf32>
    tpu.vector_store %arg6[%c0_6, %c0_7], %7 {strides = array<i32>} : memref<2x1xf32, #tpu.memory_space<vmem>>, vector<2x1xf32>,
    %c0_i32_8 = arith.constant 0 : i32
    %9 = arith.cmpi eq, %arg1, %c0_i32_8 : i32
    %10 = arith.extui %9 : i1 to i32
    %c0_i32_9 = arith.constant 0 : i32
    %11 = arith.cmpi ne, %10, %c0_i32_9 : i32
    scf.if %11 {
      %c0_10 = arith.constant 0 : index
      %c0_11 = arith.constant 0 : index
      %12 = vector.load %arg6[%c0_10, %c0_11] : memref<2x1xf32, #tpu.memory_space<vmem>>, vector<2x1xf32>
      %c0_12 = arith.constant 0 : index
      %c0_13 = arith.constant 0 : index
      %13 = vector.load %arg4[%c0_12, %c0_13] : memref<1x1xf32, #tpu.memory_space<vmem>>, vector<1x1xf32>
      %14 = vector.broadcast %13 : vector<1x1xf32> to vector<2x1xf32>
      %15 = arith.addf %12, %14 : vector<2x1xf32>
      %c0_14 = arith.constant 0 : index
      %c0_15 = arith.constant 0 : index
      %16 = vector.load %arg5[%c0_14, %c0_15] : memref<2x1xf32, #tpu.memory_space<vmem>>, vector<2x1xf32>
      tpu.vector_store %arg5[%c0_14, %c0_15], %15 {strides = array<i32>} : memref<2x1xf32, #tpu.memory_space<vmem>>, vector<2x1xf32>,
    } else {
    }
    return
  }
  func.func @transform_0(%arg0: i32, %arg1: i32) -> (i32, i32) {
    %c0_i32 = arith.constant 0 : i32
    return %arg0, %arg1 : i32, i32
  }
  func.func @transform_1(%arg0: i32, %arg1: i32) -> (i32, i32) {
    %c0_i32 = arith.constant 0 : i32
    %c0_i32_0 = arith.constant 0 : i32
    return %c0_i32, %arg1 : i32, i32
  }
  func.func @transform_2(%arg0: i32, %arg1: i32) -> (i32, i32) {
    %c0_i32 = arith.constant 0 : i32
    %c0_i32_0 = arith.constant 0 : i32
    %c0_i32_1 = arith.constant 0 : i32
    return %c0_i32, %c0_i32_0 : i32, i32
  }
  func.func @transform_3(%arg0: i32, %arg1: i32) -> (i32, i32) {
    %c0_i32 = arith.constant 0 : i32
    %c0_i32_0 = arith.constant 0 : i32
    return %arg0, %c0_i32 : i32, i32
  }
}

</mosaic_0001>

<bundles_post_ra>
// kernel: tpu_custom_call.1
= control target key start
LH: loop header
LB: loop body
LE: loop exit
PB: predicated region body
PF: predicated region fallthrough
CT: control target
= control target key end

     0   :  { %s323_s0 = inlined_call_operand.hbm [shape: f32[2,1024], index: 0, kind: input, shape index: {}]   ;;  %s324_s1 = inlined_call_operand.hbm [shape: f32[1,1024], index: 1, kind: input, shape index: {}]   ;;  %s325_s2 = inlined_call_operand.<no memory space> [shape: f32[1,1], index: 2, kind: input, shape index: {}]   ;;  %s326_s3 = inlined_call_operand.vmem [shape: f32[2,1], index: 3, kind: output, shape index: {}]  }
   0x1   :  { %v8_v0 = vstv %s325_s2 }
   0x2   :  { %9 = vst [vmem:[#allocation3] sm:$0x1] %v8_v0 }
   0x3   :  { %10 = vsyncpa [#allocation5], 0 }
   0x4   :  { %11 = vsyncpa [#allocation7], 0  ;;  %s258_s14 = smov [#allocation4]   ;;  %s259_s16 = smov [#allocation6]  }
   0x5   :  { %s18_s15 = sshll.u32 %s258_s14, 4  ;;  %s28_s17 = sshll.u32 %s259_s16, 4  ;;  %s19_s15 = int_to_ptr.vmem [resolvable:$true] %s18_s15  ;;  %s29_s17 = int_to_ptr.vmem [resolvable:$true] %s28_s17 }
   0x6   :  { %s210_s20 = scalar_lea.hbm %s323_s0, 256 }
   0x7   :  { %p211_p0 = scmp.ne.s32.totalorder %s323_s0, %s210_s20  ;;  %p214_p1 = scmp.lt.u32.totalorder %s210_s20, %s323_s0 }
   0x9   :  { %p216_p2 = pnand %p214_p1, %p211_p0 }
   0xb   :  { %219 = shalt.err (!%p216_p2)
}
   0xc   :  { %s220_s2 = scalar_lea.vmem %s19_s15, 256  ;;  %p225_p4 = scmp.lt.s32.totalorder %s19_s15, %s19_s15 }
   0xd   :  { %p221_p3 = scmp.ne.s32.totalorder %s19_s15, %s220_s2  ;;  %p226_p5 = scmp.lt.s32.totalorder %s220_s2, %s220_s2 }
   0xf   :  { %p227_p6 = por %p226_p5, %p225_p4 }
  0x11   :  { %p228_p7 = pnand %p227_p6, %p221_p3 }
  0x13   :  { %231 = shalt.err (!%p228_p7)
}
  0x14   :  { %21 = dma.hbm_to_vmem [thread:$0]  %s323_s0, 256, %s19_s15, [#allocation5]  }
  0x15   :  { %s232_s29 = scalar_lea.hbm %s324_s1, 128 }
  0x16   :  { %p233_p8 = scmp.ne.s32.totalorder %s324_s1, %s232_s29  ;;  %p236_p9 = scmp.lt.u32.totalorder %s232_s29, %s324_s1 }
  0x18   :  { %p238_p10 = pnand %p236_p9, %p233_p8 }
  0x1a   :  { %241 = shalt.err (!%p238_p10)
}
  0x1b   :  { %s242_s7 = scalar_lea.vmem %s29_s17, 128  ;;  %p247_p12 = scmp.lt.s32.totalorder %s29_s17, %s29_s17 }
  0x1c   :  { %p243_p11 = scmp.ne.s32.totalorder %s29_s17, %s242_s7  ;;  %p248_p13 = scmp.lt.s32.totalorder %s242_s7, %s242_s7 }
  0x1e   :  { %p249_p0 = por %p248_p13, %p247_p12 }
  0x20   :  { %p250_p1 = pnand %p249_p0, %p243_p11 }
  0x22   :  { %253 = shalt.err (!%p250_p1)
}
  0x23   :  { %31 = dma.hbm_to_vmem [thread:$0]  %s324_s1, 128, %s29_s17, [#allocation7]  }
  0x24   :  { %254 = dma.done.wait [#allocation5], 256  }
  0x25   :  { %255 = vsyncadd [#allocation5], 4294967040 }
  0x26   :  { %256 = dma.done.wait [#allocation7], 128  }
  0x27   :  { %257 = vsyncadd [#allocation7], 4294967168  ;;  %v51_v1 = vlaneseq  ;;  %vm44_vm0 = vcmask 1024   ;;  %v260_v2 = vmov 1983009808   ;;  %v261_v5 = vmov 0.0  }
  0x28   :  { %v86_v3 = vunpack.c.l.s4 %v260_v2  ;;  %45 = vst.msk [vmem:[#allocation2] sm:$0x3] %vm44_vm0, %v261_v5  ;;  %v49_v15 = vld [vmem:[#allocation6] sm:$0xff]  ;;  %v47_v31 = vld [vmem:[#allocation4] sm:$0xff]  ;;  %v48_v34 = vld [vmem:[#allocation4 + $0x8] sm:$0xff]  ;;  %vm165_vm1 = vcmask 1041408  }
  0x29   :  { %v52_v4 = vshrl.u32 %v51_v1, 7 }
  0x2a   :  { %v87_v6 = vunpack.c.0.s8 %v86_v3  ;;  %v205_v3 = vld [vmem:[#allocation3] ss:$0 sm:$0xff] }
  0x2b   :  { %v53_v7 = vsub.s32 0, %v52_v4  ;;  %v57_v8 = vsub.s32 1, %v52_v4  ;;  %v61_v9 = vsub.s32 2, %v52_v4  ;;  %v65_v10 = vsub.s32 3, %v52_v4 }
  0x2c   :  { %v69_v11 = vsub.s32 4, %v52_v4  ;;  %v73_v12 = vsub.s32 5, %v52_v4  ;;  %v77_v13 = vsub.s32 6, %v52_v4  ;;  %v81_v14 = vsub.s32 7, %v52_v4 }
  0x2d   :  { %v90_v16 = vsub.s32 %v87_v6, %v52_v4  ;;  %v54_v17 = vrot.slane %v49_v15, %v53_v7  ;;  %v58_v18 = vrot.slane %v49_v15, %v57_v8  ;;  %v62_v19 = vrot.slane %v49_v15, %v61_v9 }
  0x2e   :  { %v66_v20 = vrot.slane %v49_v15, %v65_v10  ;;  %v70_v21 = vrot.slane %v49_v15, %v69_v11  ;;  %v74_v22 = vrot.slane %v49_v15, %v73_v12  ;;  %v78_v23 = vrot.slane %v49_v15, %v77_v13 }
  0x2f   :  { %v82_v24 = vrot.slane %v49_v15, %v81_v14  ;;  %v83_v25 = vcombine.low %v54_v17, %v58_v18  ;;  %v46_v0 = vld [vmem:[#allocation2] sm:$0x3] }
  0x30   :  { %v84_v26 = vcombine.low %v62_v19, %v66_v20  ;;  %v100_v27 = vcombine.low %v70_v21, %v74_v22 }
  0x31   :  { %v101_v28 = vcombine.low %v78_v23, %v82_v24  ;;  %v91_v29 = vrot.slane %v83_v25, %v90_v16 }
  0x32   :  { %v98_v30 = vrot.slane %v84_v26, %v90_v16  ;;  %v108_v32 = vrot.slane %v100_v27, %v90_v16 }
  0x33   :  { %v115_v33 = vrot.slane %v101_v28, %v90_v16 }
  0x34   :  { %v99_v35 = vcombine.low %v91_v29, %v98_v30 }
  0x35   :  { %v116_v36 = vcombine.low %v108_v32, %v115_v33 }
  0x36   :  { %v119_v37 = vmul.f32 %v99_v35, %v47_v31 }
  0x37   :  { %v120_v38 = vmul.f32 %v116_v36, %v48_v34 }
  0x38   :  { %v123_v39 = vcombine.high %v119_v37, %v119_v37  ;;  %v130_v40 = vrot.slane %v119_v37, %v90_v16 }
  0x39   :  { %v140_v41 = vcombine.high %v120_v38, %v120_v38  ;;  %v147_v44 = vrot.slane %v120_v38, %v90_v16 }
  0x3a   :  { %v137_v42 = vrot.slane %v123_v39, %v90_v16  ;;  %v138_v43 = vcombine.high %v130_v40, %v130_v40  ;;  %v166_v45 = vsel %vm165_vm1, %v130_v40, 0.0 }
  0x3b   :  { %v154_v50 = vrot.slane %v140_v41, %v90_v16  ;;  %v155_v51 = vcombine.high %v147_v44, %v147_v44  ;;  %v173_v54 = vsel %vm165_vm1, %v147_v44, 0.0 }
  0x3c   :  { %v139_v46 = vcombine.high %v137_v42, %v137_v42  ;;  %v167_v47 = vsel %vm165_vm1, %v138_v43, 0.0  ;;  %v169_v48 = vsel %vm165_vm1, %v137_v42, 0.0 }
  0x3d   :  { %v168_v49 = vadd.f32 %v167_v47, %v166_v45  ;;  %v156_v56 = vcombine.high %v154_v50, %v154_v50  ;;  %v175_v57 = vsel %vm165_vm1, %v155_v51, 0.0  ;;  %v177_v59 = vsel %vm165_vm1, %v154_v50, 0.0 }
  0x3e   :  { %v171_v52 = vsel %vm165_vm1, %v139_v46, 0.0 }
  0x3f   :  { %v170_v53 = vadd.f32 %v169_v48, %v168_v49  ;;  %v179_v61 = vsel %vm165_vm1, %v156_v56, 0.0 }
  0x41   :  { %v172_v55 = vadd.f32 %v171_v52, %v170_v53 }
  0x43   :  { %v174_v58 = vadd.f32 %v173_v54, %v172_v55 }
  0x45   :  { %v176_v60 = vadd.f32 %v175_v57, %v174_v58 }
  0x47   :  { %v178_v62 = vadd.f32 %v177_v59, %v176_v60 }
  0x49   :  { %v180_v63 = vadd.f32 %v179_v61, %v178_v62 }
  0x4b   :  { %181 = vadd.xlane.f32.xlu0 %v180_v63 }
  0xd8   :  { %v182_v1 = vpop.xlane.xlu0 %181 }
  0xd9   :  { %v183_v2 = vadd.f32 %v182_v1, %v46_v0 }
  0xdb   :  { %185 = vst.msk [vmem:[#allocation2] sm:$0x3] %vm44_vm0, %v183_v2 }
  0xe2   :  { %v189_v4 = vld [vmem:[#allocation2] sm:$0x3] }
  0xe3   :  { %v197_v5 = vadd.f32 %v205_v3, %v189_v4 }
  0xe5   :  { %198 = vst.msk [vmem:[%s326_s3] sm:$0x3] %vm44_vm0, %v197_v5 }
  0xe6   :  { %203 = vsyncpa [#allocation5], 1 }
  0xe7   :  { %204 = vsyncpa [#allocation7], 1 }

</bundles_post_ra>
